<compile_context>
chip_gen: v7x
topology: tpu7x:2x2x1
jax: 0.10.0
libtpu: 0.0.40
codegen_flags: <defaults>
</compile_context>

<pallas_src>
import functools

import jax
import jax.numpy as jnp
from jax import lax
from jax.experimental import pallas as pl
from jax.experimental.pallas import tpu as pltpu

_MIB = 1024 * 1024


# ----------------------------------------------------------------------------------
# Generation-aware VMEM planning
# ----------------------------------------------------------------------------------
def _vmem_plan():
    """Returns (vmem_limit_bytes, chunk_tiling_budget_bytes)."""
    cap = 64 * _MIB  # assume v7x-class (64 MiB physical) if the query is unavailable
    try:
        info = pltpu.get_tpu_info()
        cap = int(getattr(info, "vmem_capacity_bytes", cap))
    except Exception:
        pass
    if cap >= 96 * _MIB:                     # v5e / v6e class (128 MiB physical VMEM)
        return 96 * _MIB, 72 * _MIB          # big chunks: fewer grid steps
    # v7x class or unknown: stay well inside the 64 MiB budget.
    return min(40 * _MIB, (cap * 5) // 8), min(32 * _MIB, cap // 2)


def _footprint_bytes(rows, bp, in_w2, hidden, in_bytes):
    """Approximate per-layer VMEM footprint for a chunk of `rows` time*batch rows."""
    H = hidden
    dbl = 2  # BlockSpec double-buffering
    streams = dbl * rows * (in_w2 * in_bytes + 2 * 4 + 2 * H * 4)     # x, mask, out
    resident = dbl * (in_w2 * 8 * H * in_bytes                        # W_ih combined
                      + 2 * H * 8 * H * 4                             # W_hh block-diag
                      + 8 * H * 4                                     # bias
                      + 4 * bp * 2 * H * 4)                           # h0,c0,hn,cn
    scratch = rows * (8 * H + 2 * H) * 4 + 2 * bp * 2 * H * 4         # gx, mask, state
    return streams + resident + scratch


def _pick_chunk(T, bp, in_w2, hidden, in_bytes, budget_bytes):
    """Largest divisor Tc of T whose VMEM footprint stays within budget.

    Tc = 1 always exists, so (unlike a whole-sequence fallback) this can never
    silently exceed the VMEM budget for long sequences.
    """
    best = 1
    for d in range(1, T + 1):
        if T % d == 0 and _footprint_bytes(d * bp, bp, in_w2, hidden, in_bytes) <= budget_bytes:
            best = d
    return best


# ----------------------------------------------------------------------------------
# Weight layout helpers (wrapper-side, run once)
# ----------------------------------------------------------------------------------
def _reorder_ifgo_to_ifog(w, H):
    # last-dim gate blocks [i, f, g, o] (PyTorch LSTMCell order) -> [i, f, o, g]
    return jnp.concatenate([w[..., :2 * H], w[..., 3 * H:], w[..., 2 * H:3 * H]], axis=-1)


def _interleave_dirs(fw, bw, H):
    # fw/bw: [..., 4H] (gate blocks [i,f,o,g]) -> [..., 8H] with per-gate fw/bw
    # interleaving: [i_fw i_bw f_fw f_bw o_fw o_bw g_fw g_bw]
    lead = fw.shape[:-1]
    fw4 = fw.reshape(*lead, 4, H)
    bw4 = bw.reshape(*lead, 4, H)
    return jnp.stack([fw4, bw4], axis=-2).reshape(*lead, 8 * H)


# ----------------------------------------------------------------------------------
# Fused bidirectional-LSTM kernel, one time-chunk per grid step.
# ----------------------------------------------------------------------------------
def _bilstm_chunk_kernel(hidden, chunk, batch, unroll,
                         xcat_ref,            # [rows, 2*in]  (fw | time-reversed) stream
                         mcat_ref,            # [rows, 2]     (fw | time-reversed) mask
                         h0_ref, c0_ref,      # [B, 2H]       (fw | bw) initial state
                         wih_ref,             # [2*in, 8H]    combined input weights
                         whh_ref,             # [2H, 8H]      block-diag recurrent weights (f32)
                         b_ref,               # [1, 8H]       folded b_ih + b_hh
                         out_ref,             # [rows, 2H]    fw cols | bw (reversed-time) cols
                         hn_ref, cn_ref,      # [B, 2H]
                         h_sc, c_sc,          # [B, 2H]       state carried across chunks
                         gx_sc, m_sc):        # [rows, 8H], [rows, 2H]
    H, Tc, B = hidden, chunk, batch
    rows = Tc * B

    # Loop-invariant loads hoisted off the serial recurrence path.
    h0 = h0_ref[...]
    c0 = c0_ref[...]
    whh = whh_ref[...]

    @pl.when(pl.program_id(0) == 0)
    def _init_state():
        h_sc[...] = h0
        c_sc[...] = c0

    # Hoisted input projection for this chunk: ONE big matmul (bias folded);
    # only h @ W_hh stays on the serial h->h critical path.
    gx_sc[...] = jnp.dot(xcat_ref[...], wih_ref[...],
                         preferred_element_type=jnp.float32) + b_ref[...]

    # Per-chunk mask expansion [rows, 2] -> [rows, 2H] (fw half | bw half),
    # hoisted out of the step loop.
    m2 = mcat_ref[...]
    m_sc[...] = jnp.concatenate(
        [jnp.broadcast_to(m2[:, 0:1], (rows, H)),
         jnp.broadcast_to(m2[:, 1:2], (rows, H))], axis=-1)

    def step(t, carry):
        h_cat, c_cat = carry                                   # [B, 2H] f32
        r = pl.multiple_of(t * B, 8)                           # sublane-aligned offset

        # One recurrent matmul serving both directions (block-diagonal W_hh), f32.
        gates = gx_sc[pl.ds(r, B), :] + jnp.dot(
            h_cat, whh, preferred_element_type=jnp.float32)    # [B, 8H]

        # Gate-major interleaved layout -> cell runs ONCE on [B,2H] tiles.
        sg = jax.nn.sigmoid(gates[:, :6 * H])                  # i | f | o, one EUP pass
        g_g = jnp.tanh(gates[:, 6 * H:])
        i_g = sg[:, :2 * H]
        f_g = sg[:, 2 * H:4 * H]
        o_g = sg[:, 4 * H:]

        c_new = f_g * c_cat + i_g * g_g
        h_new = o_g * jnp.tanh(c_new)

        # Masked blend back to the INITIAL state (RNNEncoder semantics), fused form.
        m = m_sc[pl.ds(r, B), :]
        h_new = h0 + (h_new - h0) * m
        c_new = c0 + (c_new - c0) * m

        out_ref[pl.ds(r, B), :] = h_new
        return h_new, c_new

    h_cat, c_cat = lax.fori_loop(0, Tc, step, (h_sc[...], c_sc[...]), unroll=unroll)
    h_sc[...] = h_cat
    c_sc[...] = c_cat
    hn_ref[...] = h_cat
    cn_ref[...] = c_cat


# ----------------------------------------------------------------------------------
# One bidirectional LSTM layer = one pallas_call over time chunks.
# ----------------------------------------------------------------------------------
def _bilstm_layer(xcat2, mcat2, h0cat, c0cat, fw_params, bw_params, *,
                  seq_len, batch, hidden, chunk, unroll,
                  matmul_dtype, vmem_limit_bytes):
    # TODO(synk): on v7x the two directions could instead be split across the two
    # TensorCores (core-parallel leading grid axis); kept fused here since v5e/v6e
    # have a single TC and the fused cell halves per-step EUP/VALU work there.
    T, B, H = seq_len, batch, hidden
    rows_total, in_w2 = xcat2.shape
    assert rows_total == T * B
    assert T % chunk == 0, "chunk must divide seq_len"
    assert B % 8 == 0, "batch must be padded to a sublane multiple"
    Tc = chunk
    C = T // Tc
    rows = Tc * B

    w_ih_fw, w_hh_fw, b_ih_fw, b_hh_fw = fw_params
    w_ih_bw, w_hh_bw, b_ih_bw, b_hh_bw = bw_params
    in_w = w_ih_fw.shape[1]
    assert in_w2 == 2 * in_w

    # Gate-major ([i,f,o,g]) + fw/bw-interleaved layouts, built once so the kernel
    # never shuffles gate columns on the serial path.
    wfi = _reorder_ifgo_to_ifog(jnp.transpose(w_ih_fw), H)          # [in, 4H]
    wbi = _reorder_ifgo_to_ifog(jnp.transpose(w_ih_bw), H)
    zi = jnp.zeros_like(wfi)
    wih_cat = jnp.concatenate(
        [_interleave_dirs(wfi, zi, H), _interleave_dirs(zi, wbi, H)],
        axis=0).astype(matmul_dtype)                                # [2*in, 8H]
    # TODO(synk): for large in/H replace the half-zero combined W_ih with two dense
    # per-direction [in,4H] matmuls (the zero blocks double the MXU flops).

    wfh = _reorder_ifgo_to_ifog(jnp.transpose(w_hh_fw), H)          # [H, 4H]
    wbh = _reorder_ifgo_to_ifog(jnp.transpose(w_hh_bw), H)
    zh = jnp.zeros_like(wfh)
    whh_cat = jnp.concatenate(
        [_interleave_dirs(wfh, zh, H), _interleave_dirs(zh, wbh, H)],
        axis=0).astype(jnp.float32)                                 # [2H, 8H], f32 recurrent path
    # TODO(synk): for H >= ~512 fall back to two per-direction [H,4H] recurrent
    # matmuls — the block-diagonal form becomes a VMEM cliff on v7x.

    bf = _reorder_ifgo_to_ifog((b_ih_fw + b_hh_fw)[None, :], H)
    bb = _reorder_ifgo_to_ifog((b_ih_bw + b_hh_bw)[None, :], H)
    b_cat = _interleave_dirs(bf, bb, H).astype(jnp.float32)         # [1, 8H]

    kernel = functools.partial(_bilstm_chunk_kernel, H, Tc, B, max(1, min(unroll, Tc)))

    def resident(shape):
        return pl.BlockSpec(shape, lambda c: (0,) * len(shape))

    in_specs = [
        pl.BlockSpec((rows, in_w2), lambda c: (c, 0)),              # x (fw | reversed) stream
        pl.BlockSpec((rows, 2), lambda c: (c, 0)),                  # narrow mask stream
        resident((B, 2 * H)), resident((B, 2 * H)),                 # h0, c0
        resident((2 * in_w, 8 * H)),                                # W_ih combined
        resident((2 * H, 8 * H)),                                   # W_hh block-diag
        resident((1, 8 * H)),                                       # folded bias
    ]
    out_specs = (
        pl.BlockSpec((rows, 2 * H), lambda c: (c, 0)),              # hidden stream
        resident((B, 2 * H)), resident((B, 2 * H)),                 # hn, cn
    )
    out_shape = (
        jax.ShapeDtypeStruct((T * B, 2 * H), jnp.float32),
        jax.ShapeDtypeStruct((B, 2 * H), jnp.float32),
        jax.ShapeDtypeStruct((B, 2 * H), jnp.float32),
    )
    scratch = [
        pltpu.VMEM((B, 2 * H), jnp.float32),                        # h state (fw | bw)
        pltpu.VMEM((B, 2 * H), jnp.float32),                        # c state (fw | bw)
        pltpu.VMEM((rows, 8 * H), jnp.float32),                     # precomputed input gates
        pltpu.VMEM((rows, 2 * H), jnp.float32),                     # expanded mask
    ]

    itemsize = jnp.dtype(matmul_dtype).itemsize
    flops = (2 * T * B * in_w2 * 8 * H                              # input projection
             + 2 * T * B * 2 * H * 8 * H)                           # recurrence
    transcendentals = T * B * 10 * H                                # sigmoid(6H)+tanh(2H)+tanh(2H)
    bytes_accessed = (T * B * in_w2 * itemsize + T * B * 2 * 4
                      + T * B * 2 * H * 4
                      + in_w2 * 8 * H * itemsize + 2 * H * 8 * H * 4 + 8 * H * 4
                      + 6 * B * 2 * H * 4)

    return pl.pallas_call(
        kernel,
        grid=(C,),
        in_specs=in_specs,
        out_specs=out_specs,
        out_shape=out_shape,
        scratch_shapes=scratch,
        compiler_params=pltpu.CompilerParams(
            dimension_semantics=("arbitrary",),      # serial recurrence, state in VMEM scratch
            vmem_limit_bytes=int(vmem_limit_bytes)),
        cost_estimate=pl.CostEstimate(
            flops=int(flops), transcendentals=int(transcendentals),
            bytes_accessed=int(bytes_accessed)),
    )(xcat2, mcat2, h0cat, c0cat, wih_cat, whh_cat, b_cat)


# ----------------------------------------------------------------------------------
# RNNEncoder.forward equivalent (batch_first=True, LSTM, bidirectional, eval mode).
# ----------------------------------------------------------------------------------
def rnn_encoder_forward(params, inputs, mask, hidden_size, *,
                        bidirectional=True, init_hidden=None,
                        chunk=None, unroll=4, matmul_dtype=jnp.float32):
    # TODO(synk): only the bidirectional LSTM cell type is implemented in Pallas
    # (RNN/GRU cells, the unidirectional path and training-mode dropout are not).
    assert bidirectional, "only the bidirectional LSTM variant is implemented"
    B, T, _ = inputs.shape
    H = hidden_size
    Bp = max(8, ((B + 7) // 8) * 8)            # sublane-align batch (unmasked vld/vst)

    vmem_limit, budget = _vmem_plan()

    x3 = jnp.transpose(inputs, (1, 0, 2)).astype(jnp.float32)       # [T, B, I]
    m2 = jnp.transpose(mask, (1, 0)).astype(jnp.float32)            # [T, B]
    if Bp != B:
        x3 = jnp.pad(x3, ((0, 0), (0, Bp - B), (0, 0)))
        m2 = jnp.pad(m2, ((0, 0), (0, Bp - B)))                     # padded rows masked out

    if init_hidden is None:
        h0 = jnp.zeros((Bp, H), jnp.float32)
        c0 = jnp.zeros((Bp, H), jnp.float32)
    else:
        h0, c0 = init_hidden
        h0 = jnp.pad(h0.astype(jnp.float32), ((0, Bp - B), (0, 0)))
        c0 = jnp.pad(c0.astype(jnp.float32), ((0, Bp - B), (0, 0)))
    h0cat = jnp.concatenate([h0, h0], axis=-1)                      # [Bp, 2H] (fw | bw)
    c0cat = jnp.concatenate([c0, c0], axis=-1)

    # Mask streamed narrow: [T*Bp, 2] = (forward-time mask | time-reversed mask).
    mcat2 = jnp.concatenate([m2[:, :, None], m2[::-1][:, :, None]],
                            axis=-1).reshape(T * Bp, 2)

    layer_in3 = x3
    hn_list, cn_list = [], []
    for layer_p in params:
        in_w = layer_in3.shape[-1]
        # Stream carries both direction orders; cast to the matmul dtype here
        # (wrapper-side cast; bf16 halves the dominant input DMA).
        xcat2 = jnp.concatenate([layer_in3, layer_in3[::-1]],
                                axis=-1).reshape(T * Bp, 2 * in_w).astype(matmul_dtype)
        layer_chunk = chunk if chunk is not None else _pick_chunk(
            T, Bp, 2 * in_w, H, jnp.dtype(matmul_dtype).itemsize, budget)
        out2, hn, cn = _bilstm_layer(
            xcat2, mcat2, h0cat, c0cat, layer_p[0], layer_p[1],
            seq_len=T, batch=Bp, hidden=H, chunk=layer_chunk, unroll=unroll,
            matmul_dtype=matmul_dtype, vmem_limit_bytes=vmem_limit)
        out_fw3 = out2[:, :H].reshape(T, Bp, H)
        out_bw3 = out2[:, H:].reshape(T, Bp, H)[::-1]               # bw half stored reversed
        layer_in3 = jnp.concatenate([out_fw3, out_bw3], axis=-1)    # [T, Bp, 2H]
        hn_list.append(hn[:B])
        cn_list.append(cn[:B])
        # TODO(synk): inter-layer dropout applies only when training=True; eval here.

    output = jnp.transpose(layer_in3[:, :B, :], (1, 0, 2))          # [B, T, 2H]
    return output, (jnp.stack(hn_list, axis=0), jnp.stack(cn_list, axis=0))


# ----------------------------------------------------------------------------------
# Parameter init (mimicking nn.LSTMCell shapes: W_ih [4H, in], W_hh [4H, H])
# ----------------------------------------------------------------------------------
def init_params(key, input_size, hidden_size, num_layers, bidirectional):
    ndir = 2 if bidirectional else 1
    bound = 1.0 / (hidden_size ** 0.5)
    params = []
    for layer in range(num_layers):
        in_sz = input_size if layer == 0 else hidden_size * ndir
        layer_p = []
        for _ in range(ndir):
            key, k1, k2, k3, k4 = jax.random.split(key, 5)
            w_ih = jax.random.uniform(k1, (4 * hidden_size, in_sz), jnp.float32, -bound, bound)
            w_hh = jax.random.uniform(k2, (4 * hidden_size, hidden_size), jnp.float32, -bound, bound)
            b_ih = jax.random.uniform(k3, (4 * hidden_size,), jnp.float32, -bound, bound)
            b_hh = jax.random.uniform(k4, (4 * hidden_size,), jnp.float32, -bound, bound)
            layer_p.append((w_ih, w_hh, b_ih, b_hh))
        params.append(layer_p)
    return params


# ----------------------------------------------------------------------------------
# Pure-JAX reference (PyTorch semantics) for correctness check
# ----------------------------------------------------------------------------------
def _ref_direction(x, m3, h0, c0, w_ih, w_hh, b_ih, b_hh, reverse):
    T = x.shape[0]
    H = h0.shape[-1]
    h, c = h0, c0
    outs = [None] * T
    order = range(T - 1, -1, -1) if reverse else range(T)
    for t in order:
        gates = x[t] @ w_ih.T + h @ w_hh.T + b_ih + b_hh
        i_g = jax.nn.sigmoid(gates[:, 0 * H:1 * H])
        f_g = jax.nn.sigmoid(gates[:, 1 * H:2 * H])
        g_g = jnp.tanh(gates[:, 2 * H:3 * H])
        o_g = jax.nn.sigmoid(gates[:, 3 * H:4 * H])
        c_new = f_g * c + i_g * g_g
        h_new = o_g * jnp.tanh(c_new)
        h = h_new * m3[t] + h0 * (1.0 - m3[t])
        c = c_new * m3[t] + c0 * (1.0 - m3[t])
        outs[t] = h
    return jnp.stack(outs, axis=0), h, c


def ref_forward(params, inputs, mask, hidden_size):
    B, T, _ = inputs.shape
    H = hidden_size
    x = jnp.transpose(inputs, (1, 0, 2))
    m3 = jnp.broadcast_to(jnp.transpose(mask)[:, :, None], (T, B, H)).astype(jnp.float32)
    h0 = jnp.zeros((B, H), jnp.float32)
    c0 = jnp.zeros((B, H), jnp.float32)
    hn_list, cn_list = [], []
    layer_in = x
    for layer_p in params:
        outs, hs, cs = [], [], []
        for d, (w_ih, w_hh, b_ih, b_hh) in enumerate(layer_p):
            o, h, c = _ref_direction(layer_in, m3, h0, c0, w_ih, w_hh, b_ih, b_hh, d == 1)
            outs.append(o); hs.append(h); cs.append(c)
        layer_in = jnp.concatenate(outs, axis=2)
        hn_list.append(jnp.concatenate(hs, axis=1))
        cn_list.append(jnp.concatenate(cs, axis=1))
    return (jnp.transpose(layer_in, (1, 0, 2)),
            (jnp.stack(hn_list, 0), jnp.stack(cn_list, 0)))


if __name__ == "__main__":
    # batch=2, seq=8, input_size=16, hidden_size=32, 1 layer, bidirectional LSTM.
    B, T, I, H = 2, 8, 16, 32
    NUM_LAYERS = 1

    key = jax.random.PRNGKey(0)
    k_in, k_p = jax.random.split(key)
    inputs = jax.random.normal(k_in, (B, T, I), jnp.float32)
    lengths = jnp.array([8, 5])
    mask = (jnp.arange(T)[None, :] < lengths[:, None]).astype(jnp.float32)   # [B, T]
    params = init_params(k_p, I, H, NUM_LAYERS, True)

    out_r, (hn_r, cn_r) = ref_forward(params, inputs, mask, H)

    # f32 path, chunk=4 -> 2 grid steps: exercises chunked streaming + state carry.
    fwd = jax.jit(functools.partial(rnn_encoder_forward, hidden_size=H, chunk=4))
    out, (hn, cn) = fwd(params, inputs, mask)
    out = jax.block_until_ready(out)
    hn = jax.block_until_ready(hn)
    cn = jax.block_until_ready(cn)

    assert out.shape == (B, T, 2 * H) and hn.shape == (NUM_LAYERS, B, 2 * H)
    assert jnp.allclose(out, out_r, atol=1e-4, rtol=1e-4)
    assert jnp.allclose(hn, hn_r, atol=1e-4, rtol=1e-4)
    assert jnp.allclose(cn, cn_r, atol=1e-4, rtol=1e-4)

    # bf16 streamed-input / W_ih path (W_hh, h/c state and accumulation stay f32);
    # auto chunk selection (footprint-based).
    out_bf, (hn_bf, cn_bf) = rnn_encoder_forward(
        params, inputs, mask, H, matmul_dtype=jnp.bfloat16)
    out_bf = jax.block_until_ready(out_bf)
    assert jnp.allclose(out_bf, out_r, atol=1e-1, rtol=1e-1)
    assert jnp.allclose(jax.block_until_ready(hn_bf), hn_r, atol=1e-1, rtol=1e-1)
    assert jnp.allclose(jax.block_until_ready(cn_bf), cn_r, atol=1e-1, rtol=1e-1)

    print("KERNEL_OK")
</pallas_src>

<mosaic_0001>
module attributes {stable_mosaic.version = 11 : i64} {
  func.func @_bilstm_chunk_kernel(%arg0: i32, %arg1: memref<32x32xf32, #tpu.memory_space<vmem>>, %arg2: memref<32x2xf32, #tpu.memory_space<vmem>>, %arg3: memref<8x64xf32, #tpu.memory_space<vmem>>, %arg4: memref<8x64xf32, #tpu.memory_space<vmem>>, %arg5: memref<32x256xf32, #tpu.memory_space<vmem>>, %arg6: memref<64x256xf32, #tpu.memory_space<vmem>>, %arg7: memref<1x256xf32, #tpu.memory_space<vmem>>, %arg8: memref<32x64xf32, #tpu.memory_space<vmem>>, %arg9: memref<8x64xf32, #tpu.memory_space<vmem>>, %arg10: memref<8x64xf32, #tpu.memory_space<vmem>>, %arg11: memref<8x64xf32, #tpu.memory_space<vmem>>, %arg12: memref<8x64xf32, #tpu.memory_space<vmem>>, %arg13: memref<32x256xf32, #tpu.memory_space<vmem>>, %arg14: memref<32x64xf32, #tpu.memory_space<vmem>>) attributes {dimension_semantics = [#tpu.dimension_semantics<arbitrary>], iteration_bounds = array<i64: 2>, scalar_prefetch = 0 : i64, scratch_operands = 4 : i64, tpu.core_type = #tpu.core_type<tc>, window_params = [{transform_indices = @transform_0, window_bounds = array<i64: 32, 32>}, {transform_indices = @transform_1, window_bounds = array<i64: 32, 2>}, {pipeline_mode = #tpu.pipeline_mode<synchronous>, transform_indices = @transform_2, window_bounds = array<i64: 8, 64>}, {pipeline_mode = #tpu.pipeline_mode<synchronous>, transform_indices = @transform_3, window_bounds = array<i64: 8, 64>}, {pipeline_mode = #tpu.pipeline_mode<synchronous>, transform_indices = @transform_4, window_bounds = array<i64: 32, 256>}, {pipeline_mode = #tpu.pipeline_mode<synchronous>, transform_indices = @transform_5, window_bounds = array<i64: 64, 256>}, {pipeline_mode = #tpu.pipeline_mode<synchronous>, transform_indices = @transform_6, window_bounds = array<i64: 1, 256>}, {transform_indices = @transform_7, window_bounds = array<i64: 32, 64>}, {pipeline_mode = #tpu.pipeline_mode<synchronous>, transform_indices = @transform_8, window_bounds = array<i64: 8, 64>}, {pipeline_mode = #tpu.pipeline_mode<synchronous>, transform_indices = @transform_9, window_bounds = array<i64: 8, 64>}]} {
    %c0 = arith.constant 0 : index
    %c0_0 = arith.constant 0 : index
    %0 = vector.load %arg3[%c0, %c0_0] : memref<8x64xf32, #tpu.memory_space<vmem>>, vector<8x64xf32>
    %c0_1 = arith.constant 0 : index
    %c0_2 = arith.constant 0 : index
    %1 = vector.load %arg4[%c0_1, %c0_2] : memref<8x64xf32, #tpu.memory_space<vmem>>, vector<8x64xf32>
    %c0_3 = arith.constant 0 : index
    %c0_4 = arith.constant 0 : index
    %2 = vector.load %arg6[%c0_3, %c0_4] : memref<64x256xf32, #tpu.memory_space<vmem>>, vector<64x256xf32>
    %c0_i32 = arith.constant 0 : i32
    %3 = arith.cmpi eq, %arg0, %c0_i32 : i32
    %4 = arith.extui %3 : i1 to i32
    %c0_i32_5 = arith.constant 0 : i32
    %5 = arith.cmpi ne, %4, %c0_i32_5 : i32
    scf.if %5 {
      %c0_54 = arith.constant 0 : index
      %c0_55 = arith.constant 0 : index
      %156 = vector.load %arg11[%c0_54, %c0_55] : memref<8x64xf32, #tpu.memory_space<vmem>>, vector<8x64xf32>
      tpu.vector_store %arg11[%c0_54, %c0_55], %0 {strides = array<i32>} : memref<8x64xf32, #tpu.memory_space<vmem>>, vector<8x64xf32>,
      %c0_56 = arith.constant 0 : index
      %c0_57 = arith.constant 0 : index
      %157 = vector.load %arg12[%c0_56, %c0_57] : memref<8x64xf32, #tpu.memory_space<vmem>>, vector<8x64xf32>
      tpu.vector_store %arg12[%c0_56, %c0_57], %1 {strides = array<i32>} : memref<8x64xf32, #tpu.memory_space<vmem>>, vector<8x64xf32>,
    } else {
    }
    %c0_6 = arith.constant 0 : index
    %c0_7 = arith.constant 0 : index
    %6 = vector.load %arg1[%c0_6, %c0_7] : memref<32x32xf32, #tpu.memory_space<vmem>>, vector<32x32xf32>
    %c0_8 = arith.constant 0 : index
    %c0_9 = arith.constant 0 : index
    %7 = vector.load %arg5[%c0_8, %c0_9] : memref<32x256xf32, #tpu.memory_space<vmem>>, vector<32x256xf32>
    %cst = arith.constant dense<0.000000e+00> : vector<32x256xf32>
    %8 = tpu.matmul %6, %7, %cst {dimension_numbers = #tpu.dot_dimension_numbers<[1], [0], [0], [1], [0, 0, 1, 1], [], []>} : vector<32x32xf32>, vector<32x256xf32>, vector<32x256xf32> -> vector<32x256xf32>
    %c0_10 = arith.constant 0 : index
    %c0_11 = arith.constant 0 : index
    %9 = vector.load %arg7[%c0_10, %c0_11] : memref<1x256xf32, #tpu.memory_space<vmem>>, vector<1x256xf32>
    %10 = vector.broadcast %9 : vector<1x256xf32> to vector<32x256xf32>
    %11 = arith.addf %8, %10 : vector<32x256xf32>
    %c0_12 = arith.constant 0 : index
    %c0_13 = arith.constant 0 : index
    %12 = vector.load %arg13[%c0_12, %c0_13] : memref<32x256xf32, #tpu.memory_space<vmem>>, vector<32x256xf32>
    tpu.vector_store %arg13[%c0_12, %c0_13], %11 {strides = array<i32>} : memref<32x256xf32, #tpu.memory_space<vmem>>, vector<32x256xf32>,
    %c0_14 = arith.constant 0 : index
    %c0_15 = arith.constant 0 : index
    %13 = vector.load %arg2[%c0_14, %c0_15] : memref<32x2xf32, #tpu.memory_space<vmem>>, vector<32x2xf32>
    %14 = vector.extract_strided_slice %13 {offsets = [0, 0], sizes = [32, 1], strides = [1, 1]} : vector<32x2xf32> to vector<32x1xf32>
    %15 = vector.shape_cast %14 : vector<32x1xf32> to vector<32x1xf32>
    %16 = vector.broadcast %15 : vector<32x1xf32> to vector<32x32xf32>
    %17 = vector.extract_strided_slice %13 {offsets = [0, 1], sizes = [32, 1], strides = [1, 1]} : vector<32x2xf32> to vector<32x1xf32>
    %18 = vector.shape_cast %17 : vector<32x1xf32> to vector<32x1xf32>
    %19 = vector.broadcast %18 : vector<32x1xf32> to vector<32x32xf32>
    %20 = tpu.concatenate %16, %19 in 1 : vector<32x32xf32>, vector<32x32xf32> -> vector<32x64xf32>
    %c0_16 = arith.constant 0 : index
    %c0_17 = arith.constant 0 : index
    %21 = vector.load %arg14[%c0_16, %c0_17] : memref<32x64xf32, #tpu.memory_space<vmem>>, vector<32x64xf32>
    tpu.vector_store %arg14[%c0_16, %c0_17], %20 {strides = array<i32>} : memref<32x64xf32, #tpu.memory_space<vmem>>, vector<32x64xf32>,
    %c0_18 = arith.constant 0 : index
    %c0_19 = arith.constant 0 : index
    %22 = vector.load %arg11[%c0_18, %c0_19] : memref<8x64xf32, #tpu.memory_space<vmem>>, vector<8x64xf32>
    %c0_20 = arith.constant 0 : index
    %c0_21 = arith.constant 0 : index
    %23 = vector.load %arg12[%c0_20, %c0_21] : memref<8x64xf32, #tpu.memory_space<vmem>>, vector<8x64xf32>
    %c0_i32_22 = arith.constant 0 : i32
    %c8_i32 = arith.constant 8 : i32
    %24 = arith.muli %c0_i32_22, %c8_i32 : i32
    %25 = tpu.assume_multiple %24, 8 : i32
    %26 = arith.index_cast %25 : i32 to index
    %c0_23 = arith.constant 0 : index
    %27 = vector.load %arg13[%26, %c0_23] : memref<32x256xf32, #tpu.memory_space<vmem>>, vector<8x256xf32>
    %cst_24 = arith.constant dense<0.000000e+00> : vector<8x256xf32>
    %28 = tpu.matmul %22, %2, %cst_24 {dimension_numbers = #tpu.dot_dimension_numbers<[1], [0], [0], [1], [0, 0, 1, 1], [], []>} : vector<8x64xf32>, vector<64x256xf32>, vector<8x256xf32> -> vector<8x256xf32>
    %29 = arith.addf %27, %28 : vector<8x256xf32>
    %30 = vector.extract_strided_slice %29 {offsets = [0, 0], sizes = [8, 192], strides = [1, 1]} : vector<8x256xf32> to vector<8x192xf32>
    %31 = arith.negf %30 : vector<8x192xf32>
    %32 = math.exp %31 : vector<8x192xf32>
    %cst_25 = arith.constant 1.000000e+00 : f32
    %33 = vector.broadcast %cst_25 : f32 to vector<8x192xf32>
    %34 = arith.addf %33, %32 : vector<8x192xf32>
    %35 = arith.divf %33, %34 : vector<8x192xf32>
    %36 = vector.extract_strided_slice %29 {offsets = [0, 192], sizes = [8, 64], strides = [1, 1]} : vector<8x256xf32> to vector<8x64xf32>
    %37 = math.tanh %36 : vector<8x64xf32>
    %38 = vector.extract_strided_slice %35 {offsets = [0, 0], sizes = [8, 64], strides = [1, 1]} : vector<8x192xf32> to vector<8x64xf32>
    %39 = vector.extract_strided_slice %35 {offsets = [0, 64], sizes = [8, 64], strides = [1, 1]} : vector<8x192xf32> to vector<8x64xf32>
    %40 = vector.extract_strided_slice %35 {offsets = [0, 128], sizes = [8, 64], strides = [1, 1]} : vector<8x192xf32> to vector<8x64xf32>
    %41 = arith.mulf %39, %23 : vector<8x64xf32>
    %42 = arith.mulf %38, %37 : vector<8x64xf32>
    %43 = arith.addf %41, %42 : vector<8x64xf32>
    %44 = math.tanh %43 : vector<8x64xf32>
    %45 = arith.mulf %40, %44 : vector<8x64xf32>
    %46 = arith.index_cast %25 : i32 to index
    %c0_26 = arith.constant 0 : index
    %47 = vector.load %arg14[%46, %c0_26] : memref<32x64xf32, #tpu.memory_space<vmem>>, vector<8x64xf32>
    %48 = arith.subf %45, %0 : vector<8x64xf32>
    %49 = arith.mulf %48, %47 : vector<8x64xf32>
    %50 = arith.addf %0, %49 : vector<8x64xf32>
    %51 = arith.subf %43, %1 : vector<8x64xf32>
    %52 = arith.mulf %51, %47 : vector<8x64xf32>
    %53 = arith.addf %1, %52 : vector<8x64xf32>
    %54 = arith.index_cast %25 : i32 to index
    %c0_27 = arith.constant 0 : index
    %55 = vector.load %arg8[%54, %c0_27] : memref<32x64xf32, #tpu.memory_space<vmem>>, vector<8x64xf32>
    tpu.vector_store %arg8[%54, %c0_27], %50 {strides = array<i32>} : memref<32x64xf32, #tpu.memory_space<vmem>>, vector<8x64xf32>,
    %c1_i32 = arith.constant 1 : i32
    %c8_i32_28 = arith.constant 8 : i32
    %56 = arith.muli %c1_i32, %c8_i32_28 : i32
    %57 = tpu.assume_multiple %56, 8 : i32
    %58 = arith.index_cast %57 : i32 to index
    %c0_29 = arith.constant 0 : index
    %59 = vector.load %arg13[%58, %c0_29] : memref<32x256xf32, #tpu.memory_space<vmem>>, vector<8x256xf32>
    %cst_30 = arith.constant dense<0.000000e+00> : vector<8x256xf32>
    %60 = tpu.matmul %50, %2, %cst_30 {dimension_numbers = #tpu.dot_dimension_numbers<[1], [0], [0], [1], [0, 0, 1, 1], [], []>} : vector<8x64xf32>, vector<64x256xf32>, vector<8x256xf32> -> vector<8x256xf32>
    %61 = arith.addf %59, %60 : vector<8x256xf32>
    %62 = vector.extract_strided_slice %61 {offsets = [0, 0], sizes = [8, 192], strides = [1, 1]} : vector<8x256xf32> to vector<8x192xf32>
    %63 = arith.negf %62 : vector<8x192xf32>
    %64 = math.exp %63 : vector<8x192xf32>
    %cst_31 = arith.constant 1.000000e+00 : f32
    %65 = vector.broadcast %cst_31 : f32 to vector<8x192xf32>
    %66 = arith.addf %65, %64 : vector<8x192xf32>
    %67 = arith.divf %65, %66 : vector<8x192xf32>
    %68 = vector.extract_strided_slice %61 {offsets = [0, 192], sizes = [8, 64], strides = [1, 1]} : vector<8x256xf32> to vector<8x64xf32>
    %69 = math.tanh %68 : vector<8x64xf32>
    %70 = vector.extract_strided_slice %67 {offsets = [0, 0], sizes = [8, 64], strides = [1, 1]} : vector<8x192xf32> to vector<8x64xf32>
    %71 = vector.extract_strided_slice %67 {offsets = [0, 64], sizes = [8, 64], strides = [1, 1]} : vector<8x192xf32> to vector<8x64xf32>
    %72 = vector.extract_strided_slice %67 {offsets = [0, 128], sizes = [8, 64], strides = [1, 1]} : vector<8x192xf32> to vector<8x64xf32>
    %73 = arith.mulf %71, %53 : vector<8x64xf32>
    %74 = arith.mulf %70, %69 : vector<8x64xf32>
    %75 = arith.addf %73, %74 : vector<8x64xf32>
    %76 = math.tanh %75 : vector<8x64xf32>
    %77 = arith.mulf %72, %76 : vector<8x64xf32>
    %78 = arith.index_cast %57 : i32 to index
    %c0_32 = arith.constant 0 : index
    %79 = vector.load %arg14[%78, %c0_32] : memref<32x64xf32, #tpu.memory_space<vmem>>, vector<8x64xf32>
    %80 = arith.subf %77, %0 : vector<8x64xf32>
    %81 = arith.mulf %80, %79 : vector<8x64xf32>
    %82 = arith.addf %0, %81 : vector<8x64xf32>
    %83 = arith.subf %75, %1 : vector<8x64xf32>
    %84 = arith.mulf %83, %79 : vector<8x64xf32>
    %85 = arith.addf %1, %84 : vector<8x64xf32>
    %86 = arith.index_cast %57 : i32 to index
    %c0_33 = arith.constant 0 : index
    %87 = vector.load %arg8[%86, %c0_33] : memref<32x64xf32, #tpu.memory_space<vmem>>, vector<8x64xf32>
    tpu.vector_store %arg8[%86, %c0_33], %82 {strides = array<i32>} : memref<32x64xf32, #tpu.memory_space<vmem>>, vector<8x64xf32>,
    %c2_i32 = arith.constant 2 : i32
    %c8_i32_34 = arith.constant 8 : i32
    %88 = arith.muli %c2_i32, %c8_i32_34 : i32
    %89 = tpu.assume_multiple %88, 8 : i32
    %90 = arith.index_cast %89 : i32 to index
    %c0_35 = arith.constant 0 : index
    %91 = vector.load %arg13[%90, %c0_35] : memref<32x256xf32, #tpu.memory_space<vmem>>, vector<8x256xf32>
    %cst_36 = arith.constant dense<0.000000e+00> : vector<8x256xf32>
    %92 = tpu.matmul %82, %2, %cst_36 {dimension_numbers = #tpu.dot_dimension_numbers<[1], [0], [0], [1], [0, 0, 1, 1], [], []>} : vector<8x64xf32>, vector<64x256xf32>, vector<8x256xf32> -> vector<8x256xf32>
    %93 = arith.addf %91, %92 : vector<8x256xf32>
    %94 = vector.extract_strided_slice %93 {offsets = [0, 0], sizes = [8, 192], strides = [1, 1]} : vector<8x256xf32> to vector<8x192xf32>
    %95 = arith.negf %94 : vector<8x192xf32>
    %96 = math.exp %95 : vector<8x192xf32>
    %cst_37 = arith.constant 1.000000e+00 : f32
    %97 = vector.broadcast %cst_37 : f32 to vector<8x192xf32>
    %98 = arith.addf %97, %96 : vector<8x192xf32>
    %99 = arith.divf %97, %98 : vector<8x192xf32>
    %100 = vector.extract_strided_slice %93 {offsets = [0, 192], sizes = [8, 64], strides = [1, 1]} : vector<8x256xf32> to vector<8x64xf32>
    %101 = math.tanh %100 : vector<8x64xf32>
    %102 = vector.extract_strided_slice %99 {offsets = [0, 0], sizes = [8, 64], strides = [1, 1]} : vector<8x192xf32> to vector<8x64xf32>
    %103 = vector.extract_strided_slice %99 {offsets = [0, 64], sizes = [8, 64], strides = [1, 1]} : vector<8x192xf32> to vector<8x64xf32>
    %104 = vector.extract_strided_slice %99 {offsets = [0, 128], sizes = [8, 64], strides = [1, 1]} : vector<8x192xf32> to vector<8x64xf32>
    %105 = arith.mulf %103, %85 : vector<8x64xf32>
    %106 = arith.mulf %102, %101 : vector<8x64xf32>
    %107 = arith.addf %105, %106 : vector<8x64xf32>
    %108 = math.tanh %107 : vector<8x64xf32>
    %109 = arith.mulf %104, %108 : vector<8x64xf32>
    %110 = arith.index_cast %89 : i32 to index
    %c0_38 = arith.constant 0 : index
    %111 = vector.load %arg14[%110, %c0_38] : memref<32x64xf32, #tpu.memory_space<vmem>>, vector<8x64xf32>
    %112 = arith.subf %109, %0 : vector<8x64xf32>
    %113 = arith.mulf %112, %111 : vector<8x64xf32>
    %114 = arith.addf %0, %113 : vector<8x64xf32>
    %115 = arith.subf %107, %1 : vector<8x64xf32>
    %116 = arith.mulf %115, %111 : vector<8x64xf32>
    %117 = arith.addf %1, %116 : vector<8x64xf32>
    %118 = arith.index_cast %89 : i32 to index
    %c0_39 = arith.constant 0 : index
    %119 = vector.load %arg8[%118, %c0_39] : memref<32x64xf32, #tpu.memory_space<vmem>>, vector<8x64xf32>
    tpu.vector_store %arg8[%118, %c0_39], %114 {strides = array<i32>} : memref<32x64xf32, #tpu.memory_space<vmem>>, vector<8x64xf32>,
    %c3_i32 = arith.constant 3 : i32
    %c8_i32_40 = arith.constant 8 : i32
    %120 = arith.muli %c3_i32, %c8_i32_40 : i32
    %121 = tpu.assume_multiple %120, 8 : i32
    %122 = arith.index_cast %121 : i32 to index
    %c0_41 = arith.constant 0 : index
    %123 = vector.load %arg13[%122, %c0_41] : memref<32x256xf32, #tpu.memory_space<vmem>>, vector<8x256xf32>
    %cst_42 = arith.constant dense<0.000000e+00> : vector<8x256xf32>
    %124 = tpu.matmul %114, %2, %cst_42 {dimension_numbers = #tpu.dot_dimension_numbers<[1], [0], [0], [1], [0, 0, 1, 1], [], []>} : vector<8x64xf32>, vector<64x256xf32>, vector<8x256xf32> -> vector<8x256xf32>
    %125 = arith.addf %123, %124 : vector<8x256xf32>
    %126 = vector.extract_strided_slice %125 {offsets = [0, 0], sizes = [8, 192], strides = [1, 1]} : vector<8x256xf32> to vector<8x192xf32>
    %127 = arith.negf %126 : vector<8x192xf32>
    %128 = math.exp %127 : vector<8x192xf32>
    %cst_43 = arith.constant 1.000000e+00 : f32
    %129 = vector.broadcast %cst_43 : f32 to vector<8x192xf32>
    %130 = arith.addf %129, %128 : vector<8x192xf32>
    %131 = arith.divf %129, %130 : vector<8x192xf32>
    %132 = vector.extract_strided_slice %125 {offsets = [0, 192], sizes = [8, 64], strides = [1, 1]} : vector<8x256xf32> to vector<8x64xf32>
    %133 = math.tanh %132 : vector<8x64xf32>
    %134 = vector.extract_strided_slice %131 {offsets = [0, 0], sizes = [8, 64], strides = [1, 1]} : vector<8x192xf32> to vector<8x64xf32>
    %135 = vector.extract_strided_slice %131 {offsets = [0, 64], sizes = [8, 64], strides = [1, 1]} : vector<8x192xf32> to vector<8x64xf32>
    %136 = vector.extract_strided_slice %131 {offsets = [0, 128], sizes = [8, 64], strides = [1, 1]} : vector<8x192xf32> to vector<8x64xf32>
    %137 = arith.mulf %135, %117 : vector<8x64xf32>
    %138 = arith.mulf %134, %133 : vector<8x64xf32>
    %139 = arith.addf %137, %138 : vector<8x64xf32>
    %140 = math.tanh %139 : vector<8x64xf32>
    %141 = arith.mulf %136, %140 : vector<8x64xf32>
    %142 = arith.index_cast %121 : i32 to index
    %c0_44 = arith.constant 0 : index
    %143 = vector.load %arg14[%142, %c0_44] : memref<32x64xf32, #tpu.memory_space<vmem>>, vector<8x64xf32>
    %144 = arith.subf %141, %0 : vector<8x64xf32>
    %145 = arith.mulf %144, %143 : vector<8x64xf32>
    %146 = arith.addf %0, %145 : vector<8x64xf32>
    %147 = arith.subf %139, %1 : vector<8x64xf32>
    %148 = arith.mulf %147, %143 : vector<8x64xf32>
    %149 = arith.addf %1, %148 : vector<8x64xf32>
    %150 = arith.index_cast %121 : i32 to index
    %c0_45 = arith.constant 0 : index
    %151 = vector.load %arg8[%150, %c0_45] : memref<32x64xf32, #tpu.memory_space<vmem>>, vector<8x64xf32>
    tpu.vector_store %arg8[%150, %c0_45], %146 {strides = array<i32>} : memref<32x64xf32, #tpu.memory_space<vmem>>, vector<8x64xf32>,
    %c4_i32 = arith.constant 4 : i32
    %c0_46 = arith.constant 0 : index
    %c0_47 = arith.constant 0 : index
    %152 = vector.load %arg11[%c0_46, %c0_47] : memref<8x64xf32, #tpu.memory_space<vmem>>, vector<8x64xf32>
    tpu.vector_store %arg11[%c0_46, %c0_47], %146 {strides = array<i32>} : memref<8x64xf32, #tpu.memory_space<vmem>>, vector<8x64xf32>,
    %c0_48 = arith.constant 0 : index
    %c0_49 = arith.constant 0 : index
    %153 = vector.load %arg12[%c0_48, %c0_49] : memref<8x64xf32, #tpu.memory_space<vmem>>, vector<8x64xf32>
    tpu.vector_store %arg12[%c0_48, %c0_49], %149 {strides = array<i32>} : memref<8x64xf32, #tpu.memory_space<vmem>>, vector<8x64xf32>,
    %c0_50 = arith.constant 0 : index
    %c0_51 = arith.constant 0 : index
    %154 = vector.load %arg9[%c0_50, %c0_51] : memref<8x64xf32, #tpu.memory_space<vmem>>, vector<8x64xf32>
    tpu.vector_store %arg9[%c0_50, %c0_51], %146 {strides = array<i32>} : memref<8x64xf32, #tpu.memory_space<vmem>>, vector<8x64xf32>,
    %c0_52 = arith.constant 0 : index
    %c0_53 = arith.constant 0 : index
    %155 = vector.load %arg10[%c0_52, %c0_53] : memref<8x64xf32, #tpu.memory_space<vmem>>, vector<8x64xf32>
    tpu.vector_store %arg10[%c0_52, %c0_53], %149 {strides = array<i32>} : memref<8x64xf32, #tpu.memory_space<vmem>>, vector<8x64xf32>,
    return
  }
  func.func @transform_0(%arg0: i32) -> (i32, i32) {
    %c0_i32 = arith.constant 0 : i32
    %c0_i32_0 = arith.constant 0 : i32
    return %arg0, %c0_i32 : i32, i32
  }
  func.func @transform_1(%arg0: i32) -> (i32, i32) {
    %c0_i32 = arith.constant 0 : i32
    %c0_i32_0 = arith.constant 0 : i32
    return %arg0, %c0_i32 : i32, i32
  }
  func.func @transform_2(%arg0: i32) -> (i32, i32) {
    %c0_i32 = arith.constant 0 : i32
    %c0_i32_0 = arith.constant 0 : i32
    %c0_i32_1 = arith.constant 0 : i32
    return %c0_i32, %c0_i32_0 : i32, i32
  }
  func.func @transform_3(%arg0: i32) -> (i32, i32) {
    %c0_i32 = arith.constant 0 : i32
    %c0_i32_0 = arith.constant 0 : i32
    %c0_i32_1 = arith.constant 0 : i32
    return %c0_i32, %c0_i32_0 : i32, i32
  }
  func.func @transform_4(%arg0: i32) -> (i32, i32) {
    %c0_i32 = arith.constant 0 : i32
    %c0_i32_0 = arith.constant 0 : i32
    %c0_i32_1 = arith.constant 0 : i32
    return %c0_i32, %c0_i32_0 : i32, i32
  }
  func.func @transform_5(%arg0: i32) -> (i32, i32) {
    %c0_i32 = arith.constant 0 : i32
    %c0_i32_0 = arith.constant 0 : i32
    %c0_i32_1 = arith.constant 0 : i32
    return %c0_i32, %c0_i32_0 : i32, i32
  }
  func.func @transform_6(%arg0: i32) -> (i32, i32) {
    %c0_i32 = arith.constant 0 : i32
    %c0_i32_0 = arith.constant 0 : i32
    %c0_i32_1 = arith.constant 0 : i32
    return %c0_i32, %c0_i32_0 : i32, i32
  }
  func.func @transform_7(%arg0: i32) -> (i32, i32) {
    %c0_i32 = arith.constant 0 : i32
    %c0_i32_0 = arith.constant 0 : i32
    return %arg0, %c0_i32 : i32, i32
  }
  func.func @transform_8(%arg0: i32) -> (i32, i32) {
    %c0_i32 = arith.constant 0 : i32
    %c0_i32_0 = arith.constant 0 : i32
    %c0_i32_1 = arith.constant 0 : i32
    return %c0_i32, %c0_i32_0 : i32, i32
  }
  func.func @transform_9(%arg0: i32) -> (i32, i32) {
    %c0_i32 = arith.constant 0 : i32
    %c0_i32_0 = arith.constant 0 : i32
    %c0_i32_1 = arith.constant 0 : i32
    return %c0_i32, %c0_i32_0 : i32, i32
  }
}

</mosaic_0001>

<bundles_post_ra>
// kernel: rnn_encoder_forward.1
= control target key start
LH: loop header
LB: loop body
LE: loop exit
PB: predicated region body
PF: predicated region fallthrough
CT: control target
= control target key end

     0   :  { %s1429_s30 = smov 0   ;;  %s1694_s0 = inlined_call_operand.vmem [shape: f32[64,32], index: 0, kind: input, shape index: {}]   ;;  %s1695_s1 = inlined_call_operand.vmem [shape: f32[64,2], index: 1, kind: input, shape index: {}]   ;;  %s1696_s2 = inlined_call_operand.vmem [shape: f32[8,64], index: 2, kind: input, shape index: {}, may-alias: {2,3}]   ;;  %s1697_s3 = inlined_call_operand.vmem [shape: f32[8,64], index: 3, kind: input, shape index: {}, may-alias: {2,3}]   ;;  %s1698_s4 = inlined_call_operand.vmem [shape: f32[32,256], index: 4, kind: input, shape index: {}]   ;;  %s1699_s5 = inlined_call_operand.vmem [shape: f32[64,256], index: 5, kind: input, shape index: {}]   ;;  %s1700_s6 = inlined_call_operand.vmem [shape: f32[1,256], index: 6, kind: input, shape index: {}]   ;;  %s1701_s7 = inlined_call_operand.vmem [shape: f32[64,64], index: 7, kind: output, shape index: {0}]   ;;  %s1702_s8 = inlined_call_operand.vmem [shape: f32[8,64], index: 8, kind: output, shape index: {1}]   ;;  %s1703_s9 = inlined_call_operand.vmem [shape: f32[8,64], index: 9, kind: output, shape index: {2}]  }
   0x1 LB: > { %s1184_s10 = sadd.s32 4294967295, %s1373_s30   ;;  %p1188_p0 = scmp.ge.s32.totalorder %s1373_s30, 1  ;;  %s1373_s30 = sphi %s1429_s30, %s20_s30  }
   0x2   : > { %p294_p1 = scmp.lt.s32.totalorder %s1373_s30, 3 }
   0x4   : > { %p295_p2 = pnand %p1188_p0, %p294_p1 }
   0x5   : > { %s1189_s11 = sshll.u32 (!%p295_p2), %s1184_s10, 2  ;;  %v1442_v0 = vld [vmem:[%s1696_s2] sm:$0xff] (!%p295_p2)  ;;  %v356_v3 = vld [vmem:[%s1699_s5 + $0x8] sm:$0xff] (!%p295_p2)  ;;  %v357_v4 = vld [vmem:[%s1699_s5 + $0x10] sm:$0xff] (!%p295_p2)  ;;  %p1195_p4 = scmp.ne.s32.totalorder (!%p295_p2), %s1184_s10, 0 }
   0x6   : > { %298 = sbr.rel (%p295_p2) target bundleno = 2422 (0x976), region = 48  ;;  %v1447_v1 = vld [vmem:[%s1697_s3] sm:$0xff] (!%p295_p2)  ;;  %p336_p3 = scmp.lt.s32.totalorder (!%p295_p2), %s1189_s11, 7  ;;  %v358_v5 = vld [vmem:[%s1699_s5 + $0x18] sm:$0xff] (!%p295_p2)  ;;  %v360_v7 = vld [vmem:[%s1699_s5 + $0x28] sm:$0xff] (!%p295_p2) }
   0x7   : > { %v355_v2 = vld [vmem:[%s1699_s5] sm:$0xff] (!%p295_p2)  ;;  %v361_v8 = vld [vmem:[%s1699_s5 + $0x30] sm:$0xff] (!%p295_p2)  ;;  %v362_v9 = vld [vmem:[%s1699_s5 + $0x38] sm:$0xff] (!%p295_p2) }
   0x8   : > { %v359_v6 = vld [vmem:[%s1699_s5 + $0x20] sm:$0xff] (!%p295_p2)  ;;  %v364_v11 = vld [vmem:[%s1699_s5 + $0x48] sm:$0xff] (!%p295_p2)  ;;  %v365_v12 = vld [vmem:[%s1699_s5 + $0x50] sm:$0xff] (!%p295_p2) }
   0x9   : > { %v363_v10 = vld [vmem:[%s1699_s5 + $0x40] sm:$0xff] (!%p295_p2)  ;;  %v366_v13 = vld [vmem:[%s1699_s5 + $0x58] sm:$0xff] (!%p295_p2)  ;;  %v368_v15 = vld [vmem:[%s1699_s5 + $0x68] sm:$0xff] (!%p295_p2) }
   0xa   : > { %v367_v14 = vld [vmem:[%s1699_s5 + $0x60] sm:$0xff] (!%p295_p2)  ;;  %v369_v16 = vld [vmem:[%s1699_s5 + $0x70] sm:$0xff] (!%p295_p2)  ;;  %v370_v17 = vld [vmem:[%s1699_s5 + $0x78] sm:$0xff] (!%p295_p2) }
   0xd   : > { %s1705_s11 = smov (!%p336_p3, %s1189_s11), 7  ;;  %374 = sbr.rel (%p1195_p4) target bundleno = 20 (0x14), region = 52 }
   0xe   : > { %s1190_s24 = sshll.u32 %s1705_s11, 3  ;;  %vm375_vm0 = vcmask (!%p1195_p4), 523264  }
   0xf   : > { %s1500_s15 = scalar_lea.vmem %s1694_s0, %s1190_s24  ;;  %s1505_s11 = scalar_lea.vmem %s1695_s1, %s1190_s24  ;;  %376 = vst.msk [vmem:[#allocation2] sm:$0xff] (!%p1195_p4), %vm375_vm0, %v1442_v0  ;;  %377 = vst.msk [vmem:[#allocation3] sm:$0xff] (!%p1195_p4), %vm375_vm0, %v1447_v1 }
  0x10   : > { %s1510_s20 = scalar_lea.vmem %s1701_s7, %s1190_s24 }
  0x14 PF: > { %v1225_v18 = vpack.c.bf16 %v358_v5, %v356_v3  ;;  %v1516_v19 = vpack.c.bf16 %v357_v4, %v355_v2  ;;  %v1518_v20 = vpack.c.bf16 %v362_v9, %v360_v7  ;;  %v383_v21 = vld [vmem:[%s1698_s4 + $0x8] sm:$0xff]  ;;  %v385_v22 = vld [vmem:[%s1698_s4 + $0x18] sm:$0xff]  ;;  %v382_v23 = vld [vmem:[%s1698_s4] sm:$0xff]  ;;  %v1375_v32 = vmov 0.0   ;;  %s1378_s22 = smov 64  }
  0x15   : > { %v1217_v24 = vpack.c.bf16 %v385_v22, %v383_v21  ;;  %v384_v25 = vld [vmem:[%s1698_s4 + $0x10] sm:$0xff]  ;;  %v387_v26 = vld [vmem:[%s1698_s4 + $0x28] sm:$0xff]  ;;  %v389_v27 = vld [vmem:[%s1698_s4 + $0x38] sm:$0xff]  ;;  %479 = vmatprep.mubr.f32.mxu0 %v1375_v32  ;;  %v1546_v33 = vpack.c.bf16 %v361_v8, %v359_v6  ;;  %v1549_v34 = vpack.c.bf16 %v366_v13, %v364_v11  ;;  %635 = vmatprep.mubr.f32.mxu1 %v1375_v32  ;;  %vm402_vm1 = vcmask 261120  }
  0x16   : > { %1226 = vmatprep.subr.bf16.mxu1 %v1225_v18  ;;  %v1219_v28 = vpack.c.bf16 %v384_v25, %v382_v23  ;;  %v1221_v29 = vpack.c.bf16 %v389_v27, %v387_v26  ;;  %v386_v30 = vld [vmem:[%s1698_s4 + $0x20] sm:$0xff]  ;;  %v388_v31 = vld [vmem:[%s1698_s4 + $0x30] sm:$0xff]  ;;  %v1553_v36 = vpack.c.bf16 %v365_v12, %v363_v10  ;;  %v1556_v37 = vpack.c.bf16 %v370_v17, %v368_v15  ;;  %v562_v59 = vld [vmem:[#allocation3] sm:$0xff] }
  0x17   : > { %1228 = vmatpush1.bf16.msra.mxu1 %v1516_v19  ;;  %1218 = vmatprep.subr.bf16.mxu0 %v1217_v24  ;;  %v1223_v35 = vpack.c.bf16 %v388_v31, %v386_v30  ;;  %v378_v38 = vld [vmem:[%s1500_s15] sm:$0xff]  ;;  %v1561_v39 = vpack.c.bf16 %v369_v16, %v367_v14  ;;  %vm556_vm2 = vcmask 523264   ;;  %v392_v41 = vlaneseq  ;;  %v379_v9 = vld [vmem:[%s1500_s15 + $0x8] sm:$0xff] }
  0x18   : > { %1230 = vmatprep.subr.bf16.mxu1 %v1518_v20  ;;  %1220 = vmatpush1.bf16.msra.mxu0 %v1219_v28  ;;  %v561_v40 = vld [vmem:[#allocation2] sm:$0xff]  ;;  %v1376_v56 = vmov 1   ;;  %v1377_v57 = vmov 0  }
  0x19   : > { %1222 = vmatprep.subr.bf16.mxu0 %v1221_v29  ;;  %v393_v42 = vshrl.u32 %v392_v41, 7  ;;  %v390_v44 = vld [vmem:[%s1700_s6] sm:$0x3]  ;;  %1318 = vset.pattern.permute.xlu0 %v1376_v56 }
  0x1a   : > { %1317 = vset.pattern.permute.xlu1 %v1377_v57  ;;  %v512_v60 = vld [vmem:[%s1505_s11] sm:$0xff] }
  0x1b   : > { %1232 = vmatpush1.bf16.msra.mxu1 %v1546_v33  ;;  %v394_v43 = vsub.s32 0, %v393_v42  ;;  %v398_v45 = vsub.s32 1, %v393_v42 }
  0x1c   : > { %1234 = vmatprep.subr.bf16.mxu1 %v1549_v34  ;;  %1224 = vmatpush1.bf16.msra.mxu0 %v1223_v35 }
  0x1d   : > { %1258 = vmatprep.subr.bf16.mxu0 %v1225_v18  ;;  %v1585_v46 = vrot.slane %v390_v44, %v394_v43  ;;  %v1587_v48 = vrot.slane %v390_v44, %v398_v45 }
  0x1f   : > { %1236 = vmatpush1.bf16.msra.mxu1 %v1553_v36  ;;  %1196 = vmatmul.mubr.msk.f32.vlgmr.msra.gmra.mrb[0].mxu0 %vm402_vm1, %v378_v38 }
  0x20   : > { %1238 = vmatprep.subr.bf16.mxu1 %v1556_v37  ;;  %485 = vmatprep.mubr.f32.mxu0 %v1375_v32 }
  0x21   : > { %1260 = vmatpush1.bf16.msra.mxu0 %v1516_v19 }
  0x22   : > { %1262 = vmatprep.subr.bf16.mxu0 %v1518_v20 }
  0x23   : > { %1240 = vmatpush1.bf16.msra.mxu1 %v1561_v39  ;;  %1197 = vmatmul.mubr.msk.f32.gmra.mrb[2].mxu0 %vm402_vm1, %v379_v9 }
  0x24   : > { %1242 = vmatprep.subr.bf16.mxu1 %v1225_v18  ;;  %491 = vmatprep.mubr.f32.mxu0 %v1375_v32 }
  0x25   : > { %1264 = vmatpush1.bf16.msra.mxu0 %v1546_v33 }
  0x26   : > { %1200 = vmatmul.mubr.msk.f32.vlgmr.msra.gmra.mrb[0].mxu1 %vm556_vm2, %v561_v40  ;;  %1266 = vmatprep.subr.bf16.mxu0 %v1549_v34  ;;  %v513_v40 = vld [vmem:[%s1505_s11 + $0x8] sm:$0xff] }
  0x27   : > { %1244 = vmatpush1.bf16.msra.mxu1 %v1516_v19  ;;  %770 = vmatprep.mubr.f32.mxu1 %v1375_v32 }
  0x28   : > { %1246 = vmatprep.subr.bf16.mxu1 %v1518_v20 }
  0x29   : > { %1268 = vmatpush1.bf16.msra.mxu0 %v1553_v36 }
  0x2a   : > { %1270 = vmatprep.subr.bf16.mxu0 %v1556_v37 }
  0x2b   : > { %1248 = vmatpush1.bf16.msra.mxu1 %v1546_v33 }
  0x2c   : > { %1250 = vmatprep.subr.bf16.mxu1 %v1549_v34 }
  0x2d   : > { %1272 = vmatpush1.bf16.msra.mxu0 %v1561_v39 }
  0x2e   : > { %1274 = vmatprep.subr.bf16.mxu0 %v1225_v18 }
  0x2f   : > { %1252 = vmatpush1.bf16.msra.mxu1 %v1553_v36 }
  0x30   : > { %1254 = vmatprep.subr.bf16.mxu1 %v1556_v37 }
  0x33   : > { %1256 = vmatpush1.bf16.msra.mxu1 %v1561_v39 }
  0xf2   : > { %v481_v47 = vpop.f32.mrb[0].mxu0 }
  0xf3   : > { %v483_v49 = vpop.f32.mrb[1].mxu0  ;;  %v482_v50 = vadd.f32 %v481_v47, %v1585_v46 }
  0xf4   : > { %v484_v51 = vadd.f32 %v483_v49, %v1587_v48 }
  0xf6   : > { %v487_v30 = vpop.f32.mrb[2].mxu0 }
  0xf7   : > { %v489_v31 = vpop.f32.mrb[3].mxu0  ;;  %v488_v41 = vadd.f32 %v487_v30, %v1585_v46 }
  0xf8   : > { %v490_v42 = vadd.f32 %v489_v31, %v1587_v48 }
  0xf9   : > { %v637_v52 = vpop.f32.mrb[0].mxu1 }
  0xfa   : > { %v642_v53 = vadd.f32 %v637_v52, %v482_v50  ;;  %v639_v54 = vpop.f32.mrb[1].mxu1 }
  0xfb   : > { %v643_v55 = vadd.f32 %v639_v54, %v484_v51 }
  0xfc   : > { %v1201_v61 = vmul.f32 -1.442695, %v642_v53 }
  0xfd   : > { %1319 = vtanh.f32 %v643_v55  ;;  %v1202_v15 = vmul.f32 -1.442695, %v643_v55 }
  0xfe   : > { %1321 = vpow2.f32 %v1201_v61  ;;  %v381_v61 = vld [vmem:[%s1500_s15 + $0x18] sm:$0xff] }
 0x107   : > { %v1320_v58 = vpop.eup %1319 }
 0x108   : > { %663 = vrot.lane.b32.xlu0 %v1320_v58, %s1378_s22  ;;  %v1322_v62 = vpop.eup %1321 }
 0x109   : > { %v650_v63 = vadd.f32 1.0, %v1322_v62 }
 0x10b   : > { %1323 = vrcp.f32 %v650_v63 }
 0x10c   : > { %658 = vrot.lane.b32.xlu0 %v562_v59, %s1378_s22  ;;  %v380_v59 = vld [vmem:[%s1500_s15 + $0x10] sm:$0xff] }
 0x10d   : > { %1198 = vmatmul.mubr.msk.f32.gmra.mrb[4].mxu0 %vm402_vm1, %v380_v59 }
 0x10e   : > { %497 = vmatprep.mubr.f32.mxu0 %v1375_v32 }
 0x110   : > { %537 = vperm.xlu0 %1318, %v512_v60  }
 0x111   : > { %1199 = vmatmul.mubr.msk.f32.gmra.mrb[6].mxu0 %vm402_vm1, %v381_v61 }
 0x112   : > { %903 = vmatprep.mubr.f32.mxu0 %v1375_v32 }
 0x115   : > { %v1324_v2 = vpop.eup %1323 }
 0x17a   : > { %v664_v3 = vpop.permute.xlu0 %663 }
 0x17b   : > { %v666_v4 = vmul.f32 %v1324_v2, %v664_v3 }
 0x17d   : > { %668 = vrot.lane.b32.xlu1 %v666_v4, %s1378_s22 }
 0x17e   : > { %v659_v5 = vpop.permute.xlu0 %658 }
 0x17f   : > { %v661_v6 = vmul.f32 %v1324_v2, %v659_v5 }
 0x181   : > { %518 = vperm.xlu1 %1317, %v512_v60  }
 0x18f   : > { %v538_v11 = vpop.permute.xlu0 %537 }
 0x1ef   : > { %v669_v7 = vpop.permute.xlu1 %668 }
 0x1f0   : > { %v671_v8 = vadd.f32 %v669_v7, %v661_v6 }
 0x1f2   : > { %1325 = vtanh.f32 %v671_v8 }
 0x1f3   : > { %1327 = vpow2.f32 %v1202_v15 }
 0x1fc   : > { %v1326_v10 = vpop.eup %1325 }
 0x1fd   : > { %674 = vrot.lane.b32.xlu1 %v1326_v10, %s1378_s22  ;;  %v1328_v16 = vpop.eup %1327 }
 0x1fe   : > { %v651_v17 = vadd.f32 1.0, %v1328_v16 }
 0x200   : > { %v519_v12 = vpop.permute.xlu1 %518  ;;  %1329 = vrcp.f32 %v651_v17 }
 0x201   : > { %v552_v13 = vsel %vm402_vm1, %v519_v12, %v538_v11  ;;  %683 = vrot.lane.b32.xlu1 %v1447_v1, %s1378_s22 }
 0x202   : > { %557 = vst.msk [vmem:[#allocation5] sm:$0xff] %vm556_vm2, %v552_v13 }
 0x209   : > { %v678_v14 = vld [vmem:[#allocation5] sm:$0xff] }
 0x20a   : > { %688 = vrot.lane.b32.xlu0 %v678_v14, %s1378_s22  ;;  %v1330_v18 = vpop.eup %1329 }
 0x26f   : > { %v675_v21 = vpop.permute.xlu1 %674 }
 0x270   : > { %v677_v22 = vmul.f32 %v1330_v18, %v675_v21 }
 0x272   : > { %v679_v23 = vsub.f32 %v677_v22, %v1442_v0 }
 0x273   : > { %v1608_v26 = vpop.permute.xlu1 %683 }
 0x274   : > { %v680_v24 = vmul.f32 %v679_v23, %v678_v14  ;;  %v686_v27 = vsub.f32 %v671_v8, %v1608_v26 }
 0x276   : > { %v681_v25 = vadd.f32 %v680_v24, %v1442_v0 }
 0x278   : > { %697 = vst.msk [vmem:[%s1510_s20] sm:$0xff] %vm556_vm2, %v681_v25  ;;  %1203 = vmatmul.mubr.msk.f32.vlgmr.msra.gmra.mrb[2].mxu1 %vm556_vm2, %v681_v25 }
 0x27c   : > { %v689_v28 = vpop.permute.xlu0 %688 }
 0x27d   : > { %v691_v29 = vmul.f32 %v689_v28, %v686_v27 }
 0x27f   : > { %693 = vrot.lane.b32.xlu1 %v691_v29, %s1378_s22 }
 0x2f1   : > { %v694_v35 = vpop.permute.xlu1 %693 }
 0x2f2   : > { %v696_v38 = vadd.f32 %v694_v35, %v1447_v1 }
 0x2f4   : > { %793 = vrot.lane.b32.xlu1 %v696_v38, %s1378_s22 }
 0x2f8   : > { %523 = vperm.xlu1 %1317, %v513_v40  }
 0x34b   : > { %v772_v43 = vpop.f32.mrb[2].mxu1 }
 0x34c   : > { %v777_v44 = vadd.f32 %v772_v43, %v488_v41  ;;  %v774_v45 = vpop.f32.mrb[3].mxu1 }
 0x34d   : > { %v778_v47 = vadd.f32 %v774_v45, %v490_v42 }
 0x34e   : > { %v1204_v50 = vmul.f32 -1.442695, %v777_v44 }
 0x34f   : > { %1331 = vtanh.f32 %v778_v47  ;;  %v1205_v5 = vmul.f32 -1.442695, %v778_v47 }
 0x350   : > { %1333 = vpow2.f32 %v1204_v50 }
 0x359   : > { %v1332_v49 = vpop.eup %1331 }
 0x35a   : > { %798 = vrot.lane.b32.xlu0 %v1332_v49, %s1378_s22  ;;  %v1334_v51 = vpop.eup %1333 }
 0x35b   : > { %v785_v52 = vadd.f32 1.0, %v1334_v51 }
 0x35d   : > { %1335 = vrcp.f32 %v785_v52 }
 0x366   : > { %v794_v56 = vpop.permute.xlu1 %793 }
 0x367   : > { %v1336_v53 = vpop.eup %1335 }
 0x368   : > { %v796_v57 = vmul.f32 %v1336_v53, %v794_v56 }
 0x377   : > { %v524_v63 = vpop.permute.xlu1 %523 }
 0x3cc   : > { %v799_v54 = vpop.permute.xlu0 %798 }
 0x3cd   : > { %v801_v55 = vmul.f32 %v1336_v53, %v799_v54 }
 0x3cf   : > { %803 = vrot.lane.b32.xlu0 %v801_v55, %s1378_s22  ;;  %v515_v55 = vld [vmem:[%s1505_s11 + $0x18] sm:$0xff] }
 0x3d3   : > { %541 = vperm.xlu0 %1318, %v513_v40  }
 0x441   : > { %v804_v58 = vpop.permute.xlu0 %803 }
 0x442   : > { %v806_v60 = vadd.f32 %v804_v58, %v796_v57 }
 0x444   : > { %1337 = vtanh.f32 %v806_v60  ;;  %v818_v14 = vsub.f32 %v806_v60, %v1608_v26 }
 0x445   : > { %1339 = vpow2.f32 %v1205_v5 }
 0x44e   : > { %v1338_v62 = vpop.eup %1337 }
 0x44f   : > { %809 = vrot.lane.b32.xlu1 %v1338_v62, %s1378_s22  ;;  %v1340_v6 = vpop.eup %1339 }
 0x450   : > { %v786_v7 = vadd.f32 1.0, %v1340_v6 }
 0x452   : > { %v542_v2 = vpop.permute.xlu0 %541  ;;  %1341 = vrcp.f32 %v786_v7 }
 0x453   : > { %v553_v3 = vsel %vm402_vm1, %v524_v63, %v542_v2 }
 0x454   : > { %558 = vst.msk [vmem:[#allocation5 + $0x8] sm:$0xff] %vm556_vm2, %v553_v3 }
 0x45b   : > { %v814_v4 = vld [vmem:[#allocation5 + $0x8] sm:$0xff] }
 0x45c   : > { %820 = vrot.lane.b32.xlu0 %v814_v4, %s1378_s22  ;;  %v1342_v8 = vpop.eup %1341 }
 0x4c1   : > { %v810_v9 = vpop.permute.xlu1 %809 }
 0x4c2   : > { %v812_v10 = vmul.f32 %v1342_v8, %v810_v9 }
 0x4c4   : > { %v815_v11 = vsub.f32 %v812_v10, %v1442_v0 }
 0x4c6   : > { %v816_v12 = vmul.f32 %v815_v11, %v814_v4 }
 0x4c8   : > { %v817_v13 = vadd.f32 %v816_v12, %v1442_v0 }
 0x4ca   : > { %1206 = vst.msk [vmem:[%s1510_s20 + $0x8] sm:$0xff] %vm556_vm2, %v817_v13  ;;  %1207 = vmatmul.mubr.msk.f32.vlgmr.msra.gmra.mrb[4].mxu0 %vm556_vm2, %v817_v13 }
 0x4cb   : > { %1276 = vmatpush1.bf16.msra.mxu0 %v1516_v19  ;;  %1036 = vmatprep.mubr.f32.mxu0 %v1375_v32 }
 0x4cc   : > { %1278 = vmatprep.subr.bf16.mxu0 %v1518_v20  ;;  %v514_v20 = vld [vmem:[%s1505_s11 + $0x10] sm:$0xff] }
 0x4ce   : > { %v821_v15 = vpop.permute.xlu0 %820 }
 0x4cf   : > { %v823_v16 = vmul.f32 %v821_v15, %v818_v14  ;;  %1280 = vmatpush1.bf16.msra.mxu0 %v1546_v33 }
 0x4d0   : > { %1282 = vmatprep.subr.bf16.mxu0 %v1549_v34 }
 0x4d1   : > { %825 = vrot.lane.b32.xlu1 %v823_v16, %s1378_s22 }
 0x4d3   : > { %1284 = vmatpush1.bf16.msra.mxu0 %v1553_v36 }
 0x4d4   : > { %1286 = vmatprep.subr.bf16.mxu0 %v1556_v37 }
 0x4d7   : > { %1288 = vmatpush1.bf16.msra.mxu0 %v1561_v39 }
 0x543   : > { %v826_v19 = vpop.permute.xlu1 %825 }
 0x544   : > { %v828_v32 = vadd.f32 %v826_v19, %v1447_v1 }
 0x546   : > { %926 = vrot.lane.b32.xlu1 %v828_v32, %s1378_s22 }
 0x54a   : > { %528 = vperm.xlu1 %1317, %v514_v20  }
 0x59d   : > { %v905_v17 = vpop.f32.mrb[4].mxu0 }
 0x59e   : > { %v907_v18 = vpop.f32.mrb[5].mxu0  ;;  %v1297_v36 = vadd.f32 %v905_v17, %v1585_v46 }
 0x59f   : > { %v1298_v33 = vadd.f32 %v907_v18, %v1587_v48 }
 0x5a0   : > { %v1208_v37 = vmul.f32 -1.442695, %v1297_v36 }
 0x5a1   : > { %1343 = vtanh.f32 %v1298_v33  ;;  %v1209_v41 = vmul.f32 -1.442695, %v1298_v33 }
 0x5a2   : > { %1345 = vpow2.f32 %v1208_v37 }
 0x5ab   : > { %v1344_v34 = vpop.eup %1343 }
 0x5ac   : > { %931 = vrot.lane.b32.xlu0 %v1344_v34, %s1378_s22  ;;  %v1346_v39 = vpop.eup %1345 }
 0x5ad   : > { %v918_v21 = vadd.f32 1.0, %v1346_v39 }
 0x5af   : > { %1347 = vrcp.f32 %v918_v21 }
 0x5b8   : > { %v927_v25 = vpop.permute.xlu1 %926 }
 0x5b9   : > { %v1348_v22 = vpop.eup %1347 }
 0x5ba   : > { %v929_v27 = vmul.f32 %v1348_v22, %v927_v25 }
 0x5c9   : > { %v529_v31 = vpop.permute.xlu1 %528 }
 0x61e   : > { %v932_v23 = vpop.permute.xlu0 %931 }
 0x61f   : > { %v934_v24 = vmul.f32 %v1348_v22, %v932_v23 }
 0x621   : > { %936 = vrot.lane.b32.xlu0 %v934_v24, %s1378_s22 }
 0x625   : > { %545 = vperm.xlu0 %1318, %v514_v20  }
 0x693   : > { %v937_v28 = vpop.permute.xlu0 %936 }
 0x694   : > { %v939_v29 = vadd.f32 %v937_v28, %v929_v27 }
 0x696   : > { %1349 = vtanh.f32 %v939_v29  ;;  %v951_v52 = vsub.f32 %v939_v29, %v1608_v26 }
 0x697   : > { %1351 = vpow2.f32 %v1209_v41 }
 0x6a0   : > { %v1350_v30 = vpop.eup %1349 }
 0x6a1   : > { %942 = vrot.lane.b32.xlu1 %v1350_v30, %s1378_s22  ;;  %v1352_v42 = vpop.eup %1351 }
 0x6a2   : > { %v919_v43 = vadd.f32 1.0, %v1352_v42 }
 0x6a4   : > { %v546_v35 = vpop.permute.xlu0 %545  ;;  %1353 = vrcp.f32 %v919_v43 }
 0x6a5   : > { %v554_v38 = vsel %vm402_vm1, %v529_v31, %v546_v35 }
 0x6a6   : > { %559 = vst.msk [vmem:[#allocation5 + $0x10] sm:$0xff] %vm556_vm2, %v554_v38 }
 0x6ad   : > { %v947_v40 = vld [vmem:[#allocation5 + $0x10] sm:$0xff] }
 0x6ae   : > { %953 = vrot.lane.b32.xlu0 %v947_v40, %s1378_s22  ;;  %v1354_v44 = vpop.eup %1353 }
 0x713   : > { %v943_v45 = vpop.permute.xlu1 %942 }
 0x714   : > { %v945_v47 = vmul.f32 %v1354_v44, %v943_v45 }
 0x716   : > { %v948_v49 = vsub.f32 %v945_v47, %v1442_v0 }
 0x718   : > { %v949_v50 = vmul.f32 %v948_v49, %v947_v40 }
 0x71a   : > { %v950_v51 = vadd.f32 %v949_v50, %v1442_v0 }
 0x71c   : > { %1210 = vst.msk [vmem:[%s1510_s20 + $0x10] sm:$0xff] %vm556_vm2, %v950_v51  ;;  %1211 = vmatmul.mubr.msk.f32.vlgmr.msra.gmra.mrb[6].mxu0 %vm556_vm2, %v950_v51 }
 0x720   : > { %v954_v53 = vpop.permute.xlu0 %953 }
 0x721   : > { %v956_v54 = vmul.f32 %v954_v53, %v951_v52 }
 0x723   : > { %958 = vrot.lane.b32.xlu1 %v956_v54, %s1378_s22 }
 0x727   : > { %533 = vperm.xlu1 %1317, %v515_v55  }
 0x795   : > { %v959_v56 = vpop.permute.xlu1 %958 }
 0x796   : > { %v961_v57 = vadd.f32 %v959_v56, %v1447_v1 }
 0x798   : > { %1059 = vrot.lane.b32.xlu1 %v961_v57, %s1378_s22 }
 0x7a6   : > { %v534_v7 = vpop.permute.xlu1 %533 }
 0x7ef   : > { %v1038_v58 = vpop.f32.mrb[6].mxu0 }
 0x7f0   : > { %v1040_v59 = vpop.f32.mrb[7].mxu0  ;;  %v1299_v62 = vadd.f32 %v1038_v58, %v1585_v46 }
 0x7f1   : > { %v1300_v60 = vadd.f32 %v1040_v59, %v1587_v48 }
 0x7f2   : > { %v1212_v63 = vmul.f32 -1.442695, %v1299_v62 }
 0x7f3   : > { %1355 = vtanh.f32 %v1300_v60  ;;  %v1213_v19 = vmul.f32 -1.442695, %v1300_v60 }
 0x7f4   : > { %1357 = vpow2.f32 %v1212_v63 }
 0x7fd   : > { %v1356_v61 = vpop.eup %1355 }
 0x7fe   : > { %1064 = vrot.lane.b32.xlu0 %v1356_v61, %s1378_s22  ;;  %v1358_v2 = vpop.eup %1357 }
 0x7ff   : > { %v1051_v3 = vadd.f32 1.0, %v1358_v2 }
 0x801   : > { %1359 = vrcp.f32 %v1051_v3 }
 0x802   : > { %549 = vperm.xlu0 %1318, %v515_v55  }
 0x80a   : > { %v1060_v46 = vpop.permute.xlu1 %1059 }
 0x80b   : > { %v1360_v4 = vpop.eup %1359 }
 0x80c   : > { %v1062_v10 = vmul.f32 %v1360_v4, %v1060_v46 }
 0x870   : > { %v1065_v5 = vpop.permute.xlu0 %1064 }
 0x871   : > { %v1067_v6 = vmul.f32 %v1360_v4, %v1065_v5 }
 0x873   : > { %1069 = vrot.lane.b32.xlu0 %v1067_v6, %s1378_s22 }
 0x881   : > { %v550_v8 = vpop.permute.xlu0 %549 }
 0x882   : > { %v555_v48 = vsel %vm402_vm1, %v534_v7, %v550_v8 }
 0x883   : > { %560 = vst.msk [vmem:[#allocation5 + $0x18] sm:$0xff] %vm556_vm2, %v555_v48 }
 0x88a   : > { %v1080_v9 = vld [vmem:[#allocation5 + $0x18] sm:$0xff] }
 0x88b   : > { %1086 = vrot.lane.b32.xlu1 %v1080_v9, %s1378_s22 }
 0x8e5   : > { %v1070_v11 = vpop.permute.xlu0 %1069 }
 0x8e6   : > { %v1072_v12 = vadd.f32 %v1070_v11, %v1062_v10 }
 0x8e8   : > { %1361 = vtanh.f32 %v1072_v12  ;;  %v1084_v14 = vsub.f32 %v1072_v12, %v1608_v26 }
 0x8e9   : > { %1363 = vpow2.f32 %v1213_v19 }
 0x8f2   : > { %v1362_v13 = vpop.eup %1361 }
 0x8f3   : > { %1075 = vrot.lane.b32.xlu0 %v1362_v13, %s1378_s22  ;;  %v1364_v32 = vpop.eup %1363 }
 0x8f4   : > { %v1052_v20 = vadd.f32 1.0, %v1364_v32 }
 0x8f6   : > { %1365 = vrcp.f32 %v1052_v20 }
 0x8fd   : > { %v1087_v15 = vpop.permute.xlu1 %1086 }
 0x8fe   : > { %v1089_v16 = vmul.f32 %v1087_v15, %v1084_v14 }
 0x900   : > { %1091 = vrot.lane.b32.xlu1 %v1089_v16, %s1378_s22  ;;  %v1366_v17 = vpop.eup %1365 }
 0x965   : > { %v1076_v18 = vpop.permute.xlu0 %1075 }
 0x966   : > { %v1078_v33 = vmul.f32 %v1366_v17, %v1076_v18 }
 0x968   : > { %v1081_v34 = vsub.f32 %v1078_v33, %v1442_v0 }
 0x96a   : > { %v1082_v36 = vmul.f32 %v1081_v34, %v1080_v9 }
 0x96c   : > { %v1083_v37 = vadd.f32 %v1082_v36, %v1442_v0 }
 0x96e   : > { %1214 = vst.msk [vmem:[%s1510_s20 + $0x18] sm:$0xff] %vm556_vm2, %v1083_v37  ;;  %1097 = vst.msk [vmem:[#allocation2] sm:$0xff] %vm556_vm2, %v1083_v37 }
 0x96f   : > { %1099 = vst.msk [vmem:[%s1702_s8] sm:$0xff] %vm556_vm2, %v1083_v37 }
 0x972   : > { %v1092_v26 = vpop.permute.xlu1 %1091 }
 0x973   : > { %v1094_v39 = vadd.f32 %v1092_v26, %v1447_v1 }
 0x975   : > { %1098 = vst.msk [vmem:[#allocation3] sm:$0xff] %vm556_vm2, %v1094_v39  ;;  %1100 = vst.msk [vmem:[%s1703_s9] sm:$0xff] %vm556_vm2, %v1094_v39 }
 0x976 PF: > { %s20_s30 = sadd.s32 1, %s1373_s30  }
 0x977   : > { %p17_p5 = scmp.ge.s32.totalorder %s20_s30, 4  }
 0x979   :  { %19 = sbr.rel (!%p17_p5) target bundleno = 1 (0x1), region = 111 }

</bundles_post_ra>
